<compile_context>
chip_gen: v6e
topology: v6e:2x2x1
jax: 0.10.0
libtpu: 0.0.40
codegen_flags: <defaults>
</compile_context>

<pallas_src>
import jax
import jax.numpy as jnp
from jax.experimental import pallas as pl
from jax.experimental.pallas import tpu as pltpu

GEM_EPS = 1e-6
BN_EPS = 1e-5
L2_EPS = 1e-12
EVAL_P = 4.0          # module in eval mode -> p = self.eval_p = 4

_HW_CHUNK = 512       # in-kernel spatial chunk for the GeM elementwise chain
_C_BLOCK = 512        # target C block size (grid reduction axis)
_LANE = 128
_VMEM_BUDGET = 32 * 1024 * 1024


def _iscnet_kernel(x_ref, w_ref, scale_ref, bias_ref, o_ref, acc_ref):
    # x_ref:     (tn, cc, HW)   feature-map slab, HW on the lane axis (native dtype)
    # w_ref:     (cc, fc_pad)   fc-weight slab (pre-transposed, zero-padded)
    # scale_ref: (1, fc_pad)    folded BN scale = gamma / sqrt(var + eps)
    # bias_ref:  (1, fc_pad)    folded BN bias  = beta - mean * scale
    # o_ref:     (tn, fc_pad)   output tile (written once, at the last C block)
    # acc_ref:   (tn, fc_pad)   f32 matmul accumulator across C blocks
    c_step = pl.program_id(1)

    @pl.when(c_step == 0)
    def _init():
        acc_ref[...] = jnp.zeros_like(acc_ref)

    tn, cc, hw = x_ref.shape
    hw_chunk = hw if hw <= _HW_CHUNK else _HW_CHUNK
    n_full = hw // hw_chunk
    rem = hw - n_full * hw_chunk

    # Sum over a spatial chunk of clamp(x, eps)^4 in f32 (two VPU squarings).
    def pow4_sum(start, size):
        xs = x_ref[:, :, pl.ds(start, size)].astype(jnp.float32)
        xc = jnp.maximum(xs, GEM_EPS)
        x2 = xc * xc
        return jnp.sum(x2 * x2, axis=-1)               # (tn, cc)

    if n_full > 1:
        def body(i, acc):
            start = pl.multiple_of(i * hw_chunk, hw_chunk)
            return acc + pow4_sum(start, hw_chunk)
        pooled = jax.lax.fori_loop(0, n_full, body,
                                   jnp.zeros((tn, cc), jnp.float32))
    else:
        pooled = pow4_sum(0, hw_chunk)
    if rem:
        pooled = pooled + pow4_sum(n_full * hw_chunk, rem)

    # GeM with p = 4: mean(x^4)^(1/4) via sqrt(sqrt(.)) (no EUP exp/log).
    gem_feat = jnp.sqrt(jnp.sqrt(pooled * (1.0 / hw)))  # (tn, cc) f32

    # fc (no bias), accumulated over C blocks on the MXU with f32 accumulation.
    acc_ref[...] += jnp.dot(gem_feat.astype(w_ref.dtype), w_ref[...],
                            preferred_element_type=jnp.float32)

    @pl.when(c_step == pl.num_programs(1) - 1)
    def _finalize():
        # BatchNorm1d (eval), folded into a single FMA.
        y = acc_ref[...] * scale_ref[...] + bias_ref[...]
        # F.normalize: y / max(||y||_2, eps) via rsqrt of the clamped sum of squares.
        sumsq = jnp.sum(y * y, axis=-1, keepdims=True)
        inv_norm = jax.lax.rsqrt(jnp.maximum(sumsq, L2_EPS * L2_EPS))
        o_ref[...] = (y * inv_norm).astype(o_ref.dtype)


def _round_up(v, m):
    return -(-v // m) * m


def _pick_c_block(c):
    """Largest multiple-of-8 divisor of C that is <= _C_BLOCK (else all of C)."""
    if c <= _C_BLOCK:
        return c
    for cand in range(_C_BLOCK, 7, -8):
        if c % cand == 0:
            return cand
    return c


def _pick_batch_tile(n, cc, hw, x_bytes, w_bytes, fc_pad):
    """Largest batch tile whose double-buffered working set fits the VMEM budget."""
    hw_vmem = _round_up(hw, _LANE)                       # lane padding in VMEM
    hw_chunk_vmem = _round_up(min(hw, _HW_CHUNK), _LANE)

    def estimate(tn):
        x_blk = tn * cc * hw_vmem * x_bytes              # streamed feature slab
        w_blk = cc * fc_pad * w_bytes                    # streamed weight slab
        out_blk = tn * fc_pad * 4
        acc = tn * fc_pad * 4
        temps = 4 * tn * cc * hw_chunk_vmem * 4          # f32 elementwise chain
        return 2 * x_blk + 2 * w_blk + 2 * out_blk + acc + temps

    tn = min(n, 128)
    if tn >= 8:
        tn = (tn // 8) * 8
    while tn > 1 and estimate(tn) > _VMEM_BUDGET:
        tn = tn - 8 if tn > 8 else tn - 1
    tn = max(tn, 1)
    # Keep >= 2 batch tiles when the batch is big enough: the "parallel" batch
    # axis is what shards work across v7x's two TensorCores.
    if n >= 16 and pl.cdiv(n, tn) < 2:
        tn = _round_up((n + 1) // 2, 8)
    tn = min(tn, n)
    return tn, estimate(tn)


def iscnet_forward(x_nchw, fc_weight, bn_gamma, bn_beta, bn_mean, bn_var):
    """ISCNet head.  x_nchw: (N, C, H, W) backbone feature map (f32 or bf16);
    fc_weight: (fc_dim, C); bn_*: (fc_dim,).  Returns (N, fc_dim) f32."""
    n, c, h, w = x_nchw.shape
    fc_dim = fc_weight.shape[0]
    hw = h * w

    # Free layout change: NCHW is contiguous, so (N, C, HW) is just a reshape
    # (no extra HBM pass).  HW lands on the lane axis; GeM reduces over it.
    x = x_nchw.reshape(n, c, hw)

    # Lane-dense output: zero-pad fc_dim up to a multiple of 128.
    fc_pad = max(_LANE, _round_up(fc_dim, _LANE))
    pad = fc_pad - fc_dim

    w_t = jnp.transpose(fc_weight)                       # (C, fc_dim), native dtype
    scale_1d = (bn_gamma.astype(jnp.float32)
                / jnp.sqrt(bn_var.astype(jnp.float32) + BN_EPS))
    bias_1d = bn_beta.astype(jnp.float32) - bn_mean.astype(jnp.float32) * scale_1d
    if pad:
        w_t = jnp.pad(w_t, ((0, 0), (0, pad)))
        scale_1d = jnp.pad(scale_1d, (0, pad))
        bias_1d = jnp.pad(bias_1d, (0, pad))
    scale = scale_1d.reshape(1, fc_pad)
    bias = bias_1d.reshape(1, fc_pad)

    cc = _pick_c_block(c)
    x_bytes = jnp.dtype(x.dtype).itemsize
    w_bytes = jnp.dtype(w_t.dtype).itemsize
    tn, vmem_est = _pick_batch_tile(n, cc, hw, x_bytes, w_bytes, fc_pad)

    grid = (pl.cdiv(n, tn), c // cc)
    vmem_limit = int(min(64 * 1024 * 1024,
                         max(2 * vmem_est, 16 * 1024 * 1024)))

    out = pl.pallas_call(
        _iscnet_kernel,
        out_shape=jax.ShapeDtypeStruct((n, fc_pad), jnp.float32),
        grid=grid,
        in_specs=[
            pl.BlockSpec((tn, cc, hw), lambda i, j: (i, j, 0)),   # feature slab
            pl.BlockSpec((cc, fc_pad), lambda i, j: (j, 0)),      # weight slab
            pl.BlockSpec((1, fc_pad), lambda i, j: (0, 0)),       # BN scale
            pl.BlockSpec((1, fc_pad), lambda i, j: (0, 0)),       # BN bias
        ],
        out_specs=pl.BlockSpec((tn, fc_pad), lambda i, j: (i, 0)),
        scratch_shapes=[pltpu.VMEM((tn, fc_pad), jnp.float32)],
        compiler_params=pltpu.CompilerParams(
            dimension_semantics=("parallel", "arbitrary"),
            vmem_limit_bytes=vmem_limit,
        ),
    )(x, w_t, scale, bias)

    return out[:, :fc_dim] if pad else out


if __name__ == "__main__":
    # Small shapes consistent with the forward pass: the backbone's last feature
    # map is (batch=2, num_chs=32, H=8, W=8); fc_dim=32.
    N, C, H, W = 2, 32, 8, 8
    FC_DIM = 32

    key = jax.random.PRNGKey(0)
    kx, kw = jax.random.split(key)

    # Backbone feature map (stand-in for backbone(x)[-1]).
    x = jax.random.normal(kx, (N, C, H, W), dtype=jnp.float32)

    # nn.Linear(C, FC_DIM, bias=False) with xavier_normal_ init.
    xavier_std = (2.0 / (C + FC_DIM)) ** 0.5
    fc_weight = xavier_std * jax.random.normal(kw, (FC_DIM, C), dtype=jnp.float32)

    # BatchNorm1d(FC_DIM): weight=1, bias=0 (per _init_params), default stats.
    bn_gamma = jnp.ones((FC_DIM,), jnp.float32)
    bn_beta = jnp.zeros((FC_DIM,), jnp.float32)
    bn_mean = jnp.zeros((FC_DIM,), jnp.float32)
    bn_var = jnp.ones((FC_DIM,), jnp.float32)

    out = jax.block_until_ready(
        iscnet_forward(x, fc_weight, bn_gamma, bn_beta, bn_mean, bn_var))

    # Pure-JAX reference (same eval-mode math as the PyTorch module).
    def ref(xf):
        xc = jnp.maximum(xf, GEM_EPS)
        pooled = jnp.mean(xc ** EVAL_P, axis=(-2, -1)) ** (1.0 / EVAL_P)  # (N, C)
        y = pooled @ fc_weight.T
        y = (y - bn_mean) / jnp.sqrt(bn_var + BN_EPS) * bn_gamma + bn_beta
        nrm = jnp.maximum(jnp.linalg.norm(y, axis=1, keepdims=True), L2_EPS)
        return y / nrm

    assert out.shape == (N, FC_DIM)
    assert jnp.allclose(out, ref(x), atol=1e-4, rtol=1e-4)

    # bf16 feature map / weight pass straight through (half the streamed HBM
    # bytes, bf16 MXU operands, f32 accumulation); looser tolerance.
    out_bf16 = jax.block_until_ready(
        iscnet_forward(x.astype(jnp.bfloat16), fc_weight.astype(jnp.bfloat16),
                       bn_gamma, bn_beta, bn_mean, bn_var))
    assert out_bf16.shape == (N, FC_DIM)
    assert jnp.allclose(out_bf16, ref(x), atol=5e-2, rtol=5e-2)

    print("KERNEL_OK")
</pallas_src>

<mosaic_0001>
module attributes {stable_mosaic.version = 11 : i64} {
  func.func @_iscnet_kernel(%arg0: i32, %arg1: i32, %arg2: memref<2x32x64xf32, #tpu.memory_space<vmem>>, %arg3: memref<32x128xf32, #tpu.memory_space<vmem>>, %arg4: memref<1x128xf32, #tpu.memory_space<vmem>>, %arg5: memref<1x128xf32, #tpu.memory_space<vmem>>, %arg6: memref<2x128xf32, #tpu.memory_space<vmem>>, %arg7: memref<2x128xf32, #tpu.memory_space<vmem>>) attributes {dimension_semantics = [#tpu.dimension_semantics<parallel>, #tpu.dimension_semantics<arbitrary>], iteration_bounds = array<i64: 1, 1>, scalar_prefetch = 0 : i64, scratch_operands = 1 : i64, tpu.core_type = #tpu.core_type<tc>, window_params = [{transform_indices = @transform_0, window_bounds = array<i64: 2, 32, 64>}, {transform_indices = @transform_1, window_bounds = array<i64: 32, 128>}, {pipeline_mode = #tpu.pipeline_mode<synchronous>, transform_indices = @transform_2, window_bounds = array<i64: 1, 128>}, {pipeline_mode = #tpu.pipeline_mode<synchronous>, transform_indices = @transform_3, window_bounds = array<i64: 1, 128>}, {transform_indices = @transform_4, window_bounds = array<i64: 2, 128>}]} {
    %c0_i32 = arith.constant 0 : i32
    %0 = arith.cmpi eq, %arg1, %c0_i32 : i32
    %1 = arith.extui %0 : i1 to i32
    %c0_i32_0 = arith.constant 0 : i32
    %2 = arith.cmpi ne, %1, %c0_i32_0 : i32
    scf.if %2 {
      %cst_14 = arith.constant 0.000000e+00 : f32
      %21 = vector.broadcast %cst_14 : f32 to vector<2x128xf32>
      %c0_15 = arith.constant 0 : index
      %c0_16 = arith.constant 0 : index
      %22 = vector.load %arg7[%c0_15, %c0_16] : memref<2x128xf32, #tpu.memory_space<vmem>>, vector<2x128xf32>
      tpu.vector_store %arg7[%c0_15, %c0_16], %21 {strides = array<i32>} : memref<2x128xf32, #tpu.memory_space<vmem>>, vector<2x128xf32>,
    } else {
    }
    %c0 = arith.constant 0 : index
    %c0_1 = arith.constant 0 : index
    %c0_2 = arith.constant 0 : index
    %3 = vector.load %arg2[%c0, %c0_1, %c0_2] : memref<2x32x64xf32, #tpu.memory_space<vmem>>, vector<2x32x64xf32>
    %cst = arith.constant 9.99999997E-7 : f32
    %4 = vector.broadcast %cst : f32 to vector<2x32x64xf32>
    %5 = arith.maximumf %3, %4 : vector<2x32x64xf32>
    %6 = arith.mulf %5, %5 : vector<2x32x64xf32>
    %7 = arith.mulf %6, %6 : vector<2x32x64xf32>
    %cst_3 = arith.constant dense<0.000000e+00> : vector<2x32xf32>
    %8 = vector.multi_reduction <add>, %7, %cst_3 [2] : vector<2x32x64xf32> to vector<2x32xf32>
    %cst_4 = arith.constant 1.562500e-02 : f32
    %9 = vector.broadcast %cst_4 : f32 to vector<2x32xf32>
    %10 = arith.mulf %8, %9 : vector<2x32xf32>
    %11 = math.sqrt %10 : vector<2x32xf32>
    %12 = math.sqrt %11 : vector<2x32xf32>
    %c0_5 = arith.constant 0 : index
    %c0_6 = arith.constant 0 : index
    %13 = vector.load %arg7[%c0_5, %c0_6] : memref<2x128xf32, #tpu.memory_space<vmem>>, vector<2x128xf32>
    %c0_7 = arith.constant 0 : index
    %c0_8 = arith.constant 0 : index
    %14 = vector.load %arg3[%c0_7, %c0_8] : memref<32x128xf32, #tpu.memory_space<vmem>>, vector<32x128xf32>
    %cst_9 = arith.constant dense<0.000000e+00> : vector<2x128xf32>
    %15 = tpu.matmul %12, %14, %cst_9 {dimension_numbers = #tpu.dot_dimension_numbers<[1], [0], [0], [1], [0, 0, 1, 1], [], []>} : vector<2x32xf32>, vector<32x128xf32>, vector<2x128xf32> -> vector<2x128xf32>
    %16 = arith.addf %13, %15 : vector<2x128xf32>
    %c0_10 = arith.constant 0 : index
    %c0_11 = arith.constant 0 : index
    %17 = vector.load %arg7[%c0_10, %c0_11] : memref<2x128xf32, #tpu.memory_space<vmem>>, vector<2x128xf32>
    tpu.vector_store %arg7[%c0_10, %c0_11], %16 {strides = array<i32>} : memref<2x128xf32, #tpu.memory_space<vmem>>, vector<2x128xf32>,
    %c0_i32_12 = arith.constant 0 : i32
    %18 = arith.cmpi eq, %arg1, %c0_i32_12 : i32
    %19 = arith.extui %18 : i1 to i32
    %c0_i32_13 = arith.constant 0 : i32
    %20 = arith.cmpi ne, %19, %c0_i32_13 : i32
    scf.if %20 {
      %c0_14 = arith.constant 0 : index
      %c0_15 = arith.constant 0 : index
      %21 = vector.load %arg7[%c0_14, %c0_15] : memref<2x128xf32, #tpu.memory_space<vmem>>, vector<2x128xf32>
      %c0_16 = arith.constant 0 : index
      %c0_17 = arith.constant 0 : index
      %22 = vector.load %arg4[%c0_16, %c0_17] : memref<1x128xf32, #tpu.memory_space<vmem>>, vector<1x128xf32>
      %23 = vector.broadcast %22 : vector<1x128xf32> to vector<2x128xf32>
      %24 = arith.mulf %21, %23 : vector<2x128xf32>
      %c0_18 = arith.constant 0 : index
      %c0_19 = arith.constant 0 : index
      %25 = vector.load %arg5[%c0_18, %c0_19] : memref<1x128xf32, #tpu.memory_space<vmem>>, vector<1x128xf32>
      %26 = vector.broadcast %25 : vector<1x128xf32> to vector<2x128xf32>
      %27 = arith.addf %24, %26 : vector<2x128xf32>
      %28 = arith.mulf %27, %27 : vector<2x128xf32>
      %cst_20 = arith.constant dense<0.000000e+00> : vector<2xf32>
      %29 = vector.multi_reduction <add>, %28, %cst_20 [1] : vector<2x128xf32> to vector<2xf32>
      %30 = vector.shape_cast %29 : vector<2xf32> to vector<2x1xf32>
      %cst_21 = arith.constant 1.000000e-24 : f32
      %31 = vector.broadcast %cst_21 : f32 to vector<2x1xf32>
      %32 = arith.maximumf %30, %31 : vector<2x1xf32>
      %33 = math.rsqrt %32 : vector<2x1xf32>
      %34 = vector.broadcast %33 : vector<2x1xf32> to vector<2x128xf32>
      %35 = arith.mulf %27, %34 : vector<2x128xf32>
      %c0_22 = arith.constant 0 : index
      %c0_23 = arith.constant 0 : index
      %36 = vector.load %arg6[%c0_22, %c0_23] : memref<2x128xf32, #tpu.memory_space<vmem>>, vector<2x128xf32>
      tpu.vector_store %arg6[%c0_22, %c0_23], %35 {strides = array<i32>} : memref<2x128xf32, #tpu.memory_space<vmem>>, vector<2x128xf32>,
    } else {
    }
    return
  }
  func.func @transform_0(%arg0: i32, %arg1: i32) -> (i32, i32, i32) {
    %c0_i32 = arith.constant 0 : i32
    %c0_i32_0 = arith.constant 0 : i32
    return %arg0, %arg1, %c0_i32 : i32, i32, i32
  }
  func.func @transform_1(%arg0: i32, %arg1: i32) -> (i32, i32) {
    %c0_i32 = arith.constant 0 : i32
    %c0_i32_0 = arith.constant 0 : i32
    return %arg1, %c0_i32 : i32, i32
  }
  func.func @transform_2(%arg0: i32, %arg1: i32) -> (i32, i32) {
    %c0_i32 = arith.constant 0 : i32
    %c0_i32_0 = arith.constant 0 : i32
    %c0_i32_1 = arith.constant 0 : i32
    return %c0_i32, %c0_i32_0 : i32, i32
  }
  func.func @transform_3(%arg0: i32, %arg1: i32) -> (i32, i32) {
    %c0_i32 = arith.constant 0 : i32
    %c0_i32_0 = arith.constant 0 : i32
    %c0_i32_1 = arith.constant 0 : i32
    return %c0_i32, %c0_i32_0 : i32, i32
  }
  func.func @transform_4(%arg0: i32, %arg1: i32) -> (i32, i32) {
    %c0_i32 = arith.constant 0 : i32
    %c0_i32_0 = arith.constant 0 : i32
    return %arg0, %c0_i32 : i32, i32
  }
}

</mosaic_0001>

<bundles_post_ra>
// kernel: tpu_custom_call.1
= control target key start
LH: loop header
LB: loop body
LE: loop exit
PB: predicated region body
PF: predicated region fallthrough
CT: control target
= control target key end

     0   :  { %9 = vsyncpa [#allocation4], 0  ;;  %s714_s0 = inlined_call_operand.hbm [shape: f32[2,32,64], index: 0, kind: input, shape index: {}]   ;;  %s715_s1 = inlined_call_operand.hbm [shape: f32[32,128], index: 1, kind: input, shape index: {}]   ;;  %s716_s2 = inlined_call_operand.vmem [shape: f32[1,128], index: 2, kind: input, shape index: {}]   ;;  %s717_s3 = inlined_call_operand.vmem [shape: f32[1,128], index: 3, kind: input, shape index: {}]   ;;  %s718_s4 = inlined_call_operand.hbm [shape: f32[2,128], index: 4, kind: output, shape index: {}]  }
   0x1   :  { %10 = vsyncpa [#allocation7], 0 }
   0x2   :  { %11 = vsyncpa [#allocation5], 0  ;;  %s535_s15 = smov [#allocation3]  }
   0x3   :  { %s17_s16 = sshll.u32 %s535_s15, 4  ;;  %s18_s16 = int_to_ptr.vmem [resolvable:$true] %s17_s16 }
   0x4   :  { %s477_s17 = scalar_lea.vmem %s18_s16, 1024  ;;  %p482_p1 = scmp.lt.s32.totalorder %s18_s16, %s18_s16 }
   0x5   :  { %p478_p0 = scmp.ne.s32.totalorder %s18_s16, %s477_s17  ;;  %p483_p2 = scmp.lt.s32.totalorder %s477_s17, %s477_s17 }
   0x7   :  { %p484_p3 = por %p483_p2, %p482_p1 }
   0x9   :  { %p485_p4 = pnand %p484_p3, %p478_p0 }
   0xb   :  { %488 = shalt.err (!%p485_p4)
}
   0xc   :  { %s536_s18 = smov 128   ;;  %s537_s19 = smov 8  }
   0xd   :  { %23 = dma.hbm_to_vmem [thread:$0]  %s714_s0, 1024, %s18_s16, [#allocation4], %s536_s18, %s536_s18, %s537_s19  }
   0xe   :  { %s538_s22 = smov [#allocation6]  }
   0xf   :  { %s29_s23 = sshll.u32 %s538_s22, 4  ;;  %s30_s23 = int_to_ptr.vmem [resolvable:$true] %s29_s23 }
  0x10   :  { %s497_s24 = scalar_lea.vmem %s30_s23, 512  ;;  %p502_p6 = scmp.lt.s32.totalorder %s30_s23, %s30_s23 }
  0x11   :  { %p498_p5 = scmp.ne.s32.totalorder %s30_s23, %s497_s24  ;;  %p503_p7 = scmp.lt.s32.totalorder %s497_s24, %s497_s24 }
  0x13   :  { %p504_p8 = por %p503_p7, %p502_p6 }
  0x15   :  { %p505_p9 = pnand %p504_p8, %p498_p5 }
  0x17   :  { %508 = shalt.err (!%p505_p9)
}
  0x18   :  { %35 = dma.hbm_to_vmem [thread:$0]  %s715_s1, 512, %s30_s23, [#allocation7], %s536_s18, %s536_s18, %s537_s19  }
  0x19   :  { %529 = dma.done.wait [#allocation4], 1024  }
  0x1a   :  { %530 = vsyncadd [#allocation4], 4294966272 }
  0x1b   :  { %531 = dma.done.wait [#allocation7], 512  }
  0x1c   :  { %532 = vsyncadd [#allocation7], 4294966784  ;;  %v55_v0 = vld [vmem:[#allocation3 + $0x20] sm:$0xff]  ;;  %v56_v2 = vld [vmem:[#allocation3 + $0x28] sm:$0xff]  ;;  %vm83_vm0 = vcmask 523264   ;;  %v539_v41 = vmov 0.0  }
  0x1d   :  { %v51_v1 = vld [vmem:[#allocation3] sm:$0xff]  ;;  %v63_v3 = vmax.f32 %v55_v0, 1e-06  ;;  %v64_v5 = vmax.f32 %v56_v2, 1e-06  ;;  %v52_v6 = vld [vmem:[#allocation3 + $0x8] sm:$0xff]  ;;  %417 = vmatprep.subr.mxu0 %v539_v41 }
  0x1e   :  { %v59_v4 = vmax.f32 %v51_v1, 1e-06  ;;  %v57_v7 = vld [vmem:[#allocation3 + $0x30] sm:$0xff]  ;;  %v60_v12 = vmax.f32 %v52_v6, 1e-06  ;;  %v58_v13 = vld [vmem:[#allocation3 + $0x38] sm:$0xff] }
  0x1f   :  { %v53_v8 = vld [vmem:[#allocation3 + $0x10] sm:$0xff]  ;;  %v71_v9 = vmul.f32 %v63_v3, %v63_v3  ;;  %v72_v11 = vmul.f32 %v64_v5, %v64_v5  ;;  %v54_v14 = vld [vmem:[#allocation3 + $0x18] sm:$0xff]  ;;  %v65_v15 = vmax.f32 %v57_v7, 1e-06  ;;  %v66_v17 = vmax.f32 %v58_v13, 1e-06 }
  0x20   :  { %v67_v10 = vmul.f32 %v59_v4, %v59_v4  ;;  %v61_v16 = vmax.f32 %v53_v8, 1e-06  ;;  %v68_v21 = vmul.f32 %v60_v12, %v60_v12  ;;  %v62_v24 = vmax.f32 %v54_v14, 1e-06  ;;  %v232_v40 = vld [vmem:[#allocation6 + $0x18] sm:$0xff]  ;;  %v231_v42 = vld [vmem:[#allocation6 + $0x10] sm:$0xff] }
  0x21   :  { %v79_v18 = vmul.f32 %v71_v9, %v71_v9  ;;  %v80_v20 = vmul.f32 %v72_v11, %v72_v11  ;;  %v73_v22 = vmul.f32 %v65_v15, %v65_v15  ;;  %v74_v29 = vmul.f32 %v66_v17, %v66_v17  ;;  %50 = vst [vmem:[#allocation2] sm:$0x3] %v539_v41  ;;  %v230_v43 = vld [vmem:[#allocation6 + $0x8] sm:$0xff]  ;;  %v229_v44 = vld [vmem:[#allocation6] sm:$0xff]  ;;  %s541_s29 = smov [#allocation8]  }
  0x22   :  { %v75_v19 = vmul.f32 %v67_v10, %v67_v10  ;;  %v69_v23 = vmul.f32 %v61_v16, %v61_v16  ;;  %v76_v27 = vmul.f32 %v68_v21, %v68_v21  ;;  %v70_v33 = vmul.f32 %v62_v24, %v62_v24  ;;  %418 = vmatpush3.msra.mxu0 %v232_v40  ;;  %s399_s30 = sshll.u32 %s541_s29, 4  ;;  %s400_s30 = int_to_ptr.vmem [resolvable:$true] %s399_s30 }
  0x23   :  { %v96_v25 = vsel %vm83_vm0, %v79_v18, 0.0  ;;  %v99_v28 = vsel %vm83_vm0, %v80_v20, 0.0  ;;  %v81_v31 = vmul.f32 %v73_v22, %v73_v22  ;;  %v82_v36 = vmul.f32 %v74_v29, %v74_v29  ;;  %419 = vmatprep.subr.mxu0 %v539_v41  ;;  %p514_p11 = scmp.lt.s32.totalorder %s400_s30, %s400_s30 }
  0x24   :  { %v84_v26 = vsel %vm83_vm0, %v75_v19, 0.0  ;;  %97 = vadd.xlane.f32.xlu1 %v96_v25  ;;  %v87_v30 = vsel %vm83_vm0, %v76_v27, 0.0  ;;  %v77_v32 = vmul.f32 %v69_v23, %v69_v23  ;;  %v78_v37 = vmul.f32 %v70_v33, %v70_v33  ;;  %420 = vmatpush3.msra.mxu0 %v231_v42 }
  0x25   :  { %85 = vadd.xlane.f32.xlu0 %v84_v26  ;;  %v102_v34 = vsel %vm83_vm0, %v81_v31, 0.0  ;;  %v105_v38 = vsel %vm83_vm0, %v82_v36, 0.0  ;;  %vm540_vm1 = vmmov 0   ;;  %421 = vmatprep.subr.mxu0 %v539_v41  ;;  %v241_v10 = vlaneseq }
  0x26   :  { %v90_v35 = vsel %vm83_vm0, %v77_v32, 0.0  ;;  %v93_v39 = vsel %vm83_vm0, %v78_v37, 0.0  ;;  %425 = vmatprep.mubr.msk.f32.mxu0 %vm540_vm1, %v539_v41  ;;  %422 = vmatpush3.msra.mxu0 %v230_v43 }
  0x27   :  { %423 = vmatprep.subr.mxu0 %v539_v41  ;;  %v244_v32 = vshrl.u32 %v241_v10, 7 }
  0x28   :  { %100 = vadd.xlane.f32.xlu1 %v99_v28  ;;  %424 = vmatpush3.msra.mxu0 %v229_v44  ;;  %v242_v28 = vand.u32 127, %v241_v10 }
  0x29   :  { %88 = vadd.xlane.f32.xlu0 %v87_v30 }
  0x2a   :  { %v254_v41 = vadd.s32 4294967280, %v242_v28  ;;  %v261_v42 = vadd.s32 4294967272, %v242_v28  ;;  %v621_v44 = vsub.s32 %v242_v28, %v244_v32 }
  0x2c   :  { %103 = vadd.xlane.f32.xlu1 %v102_v34 }
  0x2d   :  { %91 = vadd.xlane.f32.xlu0 %v90_v35 }
  0x30   :  { %106 = vadd.xlane.f32.xlu1 %v105_v38 }
  0x31   :  { %94 = vadd.xlane.f32.xlu0 %v93_v39  ;;  %v247_v39 = vadd.s32 4294967288, %v242_v28 }
  0xad   :  { %v98_v45 = vpop.xlane.xlu1 %97 }
  0xae   :  { %v86_v46 = vpop.xlane.xlu0 %85  ;;  %v112_v47 = vmul.f32 0.015625, %v98_v45 }
  0xaf   :  { %v108_v48 = vmul.f32 0.015625, %v86_v46  ;;  %v624_v46 = vsub.s32 %v247_v39, %v244_v32 }
  0xb0   :  { %435 = vrsqrt.f32 %v112_v47  ;;  %vm146_vm2 = vcmp.eq.f32.partialorder %v112_v47, inf  ;;  %v149_v0 = vand.u32 2147483648, %v112_v47  ;;  %vm148_vm3 = vcmp.eq.f32.partialorder %v112_v47, 0.0 }
  0xb1   :  { %437 = vrsqrt.f32 %v108_v48  ;;  %v101_v49 = vpop.xlane.xlu1 %100  ;;  %vm118_vm4 = vcmp.eq.f32.partialorder %v108_v48, inf  ;;  %v121_v3 = vand.u32 2147483648, %v108_v48  ;;  %vm120_vm5 = vcmp.eq.f32.partialorder %v108_v48, 0.0 }
  0xb2   :  { %v89_v50 = vpop.xlane.xlu0 %88  ;;  %v113_v51 = vmul.f32 0.015625, %v101_v49 }
  0xb3   :  { %v109_v52 = vmul.f32 0.015625, %v89_v50 }
  0xb4   :  { %439 = vrsqrt.f32 %v113_v51  ;;  %vm153_vm6 = vcmp.eq.f32.partialorder %v113_v51, inf  ;;  %vm155_vm7 = vcmp.eq.f32.partialorder %v113_v51, 0.0  ;;  %v156_v11 = vand.u32 2147483648, %v113_v51 }
  0xb5   :  { %441 = vrsqrt.f32 %v109_v52  ;;  %v104_v53 = vpop.xlane.xlu1 %103  ;;  %vm125_vm8 = vcmp.eq.f32.partialorder %v109_v52, inf  ;;  %v128_v14 = vand.u32 2147483648, %v109_v52  ;;  %vm127_vm9 = vcmp.eq.f32.partialorder %v109_v52, 0.0 }
  0xb6   :  { %v92_v54 = vpop.xlane.xlu0 %91  ;;  %v114_v55 = vmul.f32 0.015625, %v104_v53 }
  0xb7   :  { %v110_v56 = vmul.f32 0.015625, %v92_v54 }
  0xb8   :  { %443 = vrsqrt.f32 %v114_v55  ;;  %vm160_vm10 = vcmp.eq.f32.partialorder %v114_v55, inf  ;;  %v163_v21 = vand.u32 2147483648, %v114_v55  ;;  %vm162_vm11 = vcmp.eq.f32.partialorder %v114_v55, 0.0 }
  0xb9   :  { %445 = vrsqrt.f32 %v110_v56  ;;  %v107_v57 = vpop.xlane.xlu1 %106  ;;  %vm132_vm12 = vcmp.eq.f32.partialorder %v110_v56, inf  ;;  %v135_v24 = vand.u32 2147483648, %v110_v56  ;;  %vm134_vm13 = vcmp.eq.f32.partialorder %v110_v56, 0.0 }
  0xba   :  { %v95_v58 = vpop.xlane.xlu0 %94  ;;  %v581_v59 = vmul.f32 0.015625, %v107_v57 }
  0xbb   :  { %v583_v60 = vmul.f32 0.015625, %v95_v58 }
  0xbc   :  { %447 = vrsqrt.f32 %v581_v59  ;;  %vm167_vm14 = vcmp.eq.f32.partialorder %v581_v59, inf  ;;  %v170_v33 = vand.u32 2147483648, %v581_v59  ;;  %vm169_vm15 = vcmp.eq.f32.partialorder %v581_v59, 0.0 }
  0xbd   :  { %v436_v61 = vpop.eup %435  ;;  %449 = vrsqrt.f32 %v583_v60  ;;  %vm139_vm0 = vcmp.eq.f32.partialorder %v583_v60, inf  ;;  %v142_v36 = vand.u32 2147483648, %v583_v60  ;;  %vm141_vm1 = vcmp.eq.f32.partialorder %v583_v60, 0.0 }
  0xbe   :  { %v438_v62 = vpop.eup %437  ;;  %v145_v63 = vmul.f32 %v436_v61, %v112_v47 }
  0xbf   :  { %v117_v1 = vmul.f32 %v438_v62, %v108_v48 }
  0xc0   :  { %v147_v2 = vsel %vm146_vm2, %v112_v47, %v145_v63  ;;  %v626_v47 = vsub.s32 %v254_v41, %v244_v32 }
  0xc1   :  { %v440_v4 = vpop.eup %439  ;;  %v587_v5 = vsel %vm148_vm3, %v149_v0, %v147_v2  ;;  %v119_v6 = vsel %vm118_vm4, %v108_v48, %v117_v1  ;;  %v628_v48 = vsub.s32 %v261_v42, %v244_v32  ;;  %v410_v42 = vld [vmem:[%s716_s2] ss:$0 sm:$0xff]  ;;  %s509_s2 = scalar_lea.vmem %s400_s30, 32 }
  0xc2   :  { %v442_v7 = vpop.eup %441  ;;  %v589_v8 = vsel %vm120_vm5, %v121_v3, %v119_v6  ;;  %v152_v9 = vmul.f32 %v440_v4, %v113_v51  ;;  %451 = vrsqrt.f32 %v587_v5  ;;  %vm202_vm2 = vcmp.eq.f32.partialorder %v587_v5, inf  ;;  %p510_p10 = scmp.ne.s32.totalorder %s400_s30, %s509_s2  ;;  %p515_p12 = scmp.lt.s32.totalorder %s509_s2, %s509_s2 }
  0xc3   :  { %v124_v12 = vmul.f32 %v442_v7, %v109_v52  ;;  %453 = vrsqrt.f32 %v589_v8  ;;  %vm174_vm3 = vcmp.eq.f32.partialorder %v589_v8, inf  ;;  %vm176_vm4 = vcmp.eq.f32.partialorder %v589_v8, 0.0 }
  0xc4   :  { %v154_v13 = vsel %vm153_vm6, %v113_v51, %v152_v9  ;;  %v177_v50 = vand.u32 2147483648, %v589_v8  ;;  %vm204_vm5 = vcmp.eq.f32.partialorder %v587_v5, 0.0  ;;  %v205_v53 = vand.u32 2147483648, %v587_v5  ;;  %p516_p13 = por %p515_p12, %p514_p11 }
  0xc5   :  { %v444_v15 = vpop.eup %443  ;;  %v593_v16 = vsel %vm155_vm7, %v156_v11, %v154_v13  ;;  %v126_v17 = vsel %vm125_vm8, %v109_v52, %v124_v12 }
  0xc6   :  { %v446_v18 = vpop.eup %445  ;;  %455 = vrsqrt.f32 %v593_v16  ;;  %v596_v19 = vsel %vm127_vm9, %v128_v14, %v126_v17  ;;  %v159_v20 = vmul.f32 %v444_v15, %v114_v55  ;;  %vm209_vm6 = vcmp.eq.f32.partialorder %v593_v16, inf  ;;  %p517_p0 = pnand %p516_p13, %p510_p10 }
  0xc7   :  { %457 = vrsqrt.f32 %v596_v19  ;;  %v131_v22 = vmul.f32 %v446_v18, %v110_v56  ;;  %vm181_vm7 = vcmp.eq.f32.partialorder %v596_v19, inf  ;;  %vm183_vm8 = vcmp.eq.f32.partialorder %v596_v19, 0.0 }
  0xc8   :  { %v161_v23 = vsel %vm160_vm10, %v114_v55, %v159_v20  ;;  %vm252_vm9 = vcmask 130112   ;;  %v184_v57 = vand.u32 2147483648, %v596_v19  ;;  %vm211_vm10 = vcmp.eq.f32.partialorder %v593_v16, 0.0 }
  0xc9   :  { %v448_v25 = vpop.eup %447  ;;  %v599_v26 = vsel %vm162_vm11, %v163_v21, %v161_v23  ;;  %v133_v27 = vsel %vm132_vm12, %v110_v56, %v131_v22  ;;  %vm259_vm11 = vcmask 195712  }
  0xca   :  { %v450_v29 = vpop.eup %449  ;;  %459 = vrsqrt.f32 %v599_v26  ;;  %v602_v30 = vsel %vm134_vm13, %v135_v24, %v133_v27  ;;  %v166_v31 = vmul.f32 %v448_v25, %v581_v59  ;;  %v219_v6 = vand.u32 2147483648, %v599_v26 }
  0xcb   :  { %461 = vrsqrt.f32 %v602_v30  ;;  %v138_v34 = vmul.f32 %v450_v29, %v583_v60  ;;  %vm188_vm12 = vcmp.eq.f32.partialorder %v602_v30, inf  ;;  %vm190_vm13 = vcmp.eq.f32.partialorder %v602_v30, 0.0 }
  0xcc   :  { %v168_v35 = vsel %vm167_vm14, %v581_v59, %v166_v31  ;;  %v212_v59 = vand.u32 2147483648, %v593_v16  ;;  %vm216_vm14 = vcmp.eq.f32.partialorder %v599_v26, inf  ;;  %v191_v63 = vand.u32 2147483648, %v602_v30 }
  0xcd   :  { %v613_v37 = vsel %vm169_vm15, %v170_v33, %v168_v35  ;;  %v140_v38 = vsel %vm139_vm0, %v583_v60, %v138_v34  ;;  %vm266_vm15 = vcmask 261312   ;;  %vm218_vm0 = vcmp.eq.f32.partialorder %v599_v26, 0.0 }
  0xce   :  { %463 = vrsqrt.f32 %v613_v37  ;;  %v618_v40 = vsel %vm141_vm1, %v142_v36, %v140_v38  ;;  %vm223_vm1 = vcmp.eq.f32.partialorder %v613_v37, inf  ;;  %v226_v20 = vand.u32 2147483648, %v613_v37  ;;  %v228_v38 = vld [vmem:[#allocation2] sm:$0x3] }
  0xcf   :  { %465 = vrsqrt.f32 %v618_v40  ;;  %v452_v43 = vpop.eup %451  ;;  %v198_v22 = vand.u32 2147483648, %v618_v40 }
  0xd0   :  { %v454_v45 = vpop.eup %453  ;;  %v201_v52 = vmul.f32 %v452_v43, %v587_v5 }
  0xd1   :  { %v173_v55 = vmul.f32 %v454_v45, %v589_v8 }
  0xd2   :  { %v203_v0 = vsel %vm202_vm2, %v587_v5, %v201_v52  ;;  %vm225_vm2 = vcmp.eq.f32.partialorder %v613_v37, 0.0 }
  0xd3   :  { %v456_v49 = vpop.eup %455  ;;  %v175_v2 = vsel %vm174_vm3, %v589_v8, %v173_v55  ;;  %vm195_vm3 = vcmp.eq.f32.partialorder %v618_v40, inf  ;;  %v206_v12 = vsel %vm204_vm5, %v205_v53, %v203_v0  ;;  %vm287_vm5 = vcmask 1041409  }
  0xd4   :  { %v458_v51 = vpop.eup %457  ;;  %v208_v54 = vmul.f32 %v456_v49, %v593_v16  ;;  %v178_v15 = vsel %vm176_vm4, %v177_v50, %v175_v2  ;;  %v271_v24 = vrot.slane %v206_v12, %v621_v44  ;;  %vm197_vm4 = vcmp.eq.f32.partialorder %v618_v40, 0.0 }
  0xd5   :  { %v180_v56 = vmul.f32 %v458_v51, %v596_v19  ;;  %v246_v27 = vrot.slane %v178_v15, %v621_v44  ;;  %v411_v44 = vld [vmem:[%s717_s3] ss:$0 sm:$0xff] }
  0xd6   :  { %v210_v58 = vsel %vm209_vm6, %v593_v16, %v208_v54  ;;  %vm289_vm6 = vcmask 261120  }
  0xd7   :  { %v460_v60 = vpop.eup %459  ;;  %v182_v61 = vsel %vm181_vm7, %v596_v19, %v180_v56  ;;  %v213_v4 = vsel %vm211_vm10, %v212_v59, %v210_v58  ;;  %vm385_vm7 = vcmask 1041408  }
  0xd8   :  { %v462_v62 = vpop.eup %461  ;;  %v215_v1 = vmul.f32 %v460_v60, %v599_v26  ;;  %v185_v7 = vsel %vm183_vm8, %v184_v57, %v182_v61  ;;  %v275_v18 = vrot.slane %v213_v4, %v624_v46 }
  0xd9   :  { %v187_v3 = vmul.f32 %v462_v62, %v602_v30  ;;  %v251_v21 = vrot.slane %v185_v7, %v624_v46 }
  0xda   :  { %v217_v9 = vsel %vm216_vm14, %v599_v26, %v215_v1  ;;  %v276_v29 = vsel %vm252_vm9, %v275_v18, %v271_v24 }
  0xdb   :  { %v464_v10 = vpop.eup %463  ;;  %v189_v11 = vsel %vm188_vm12, %v602_v30, %v187_v3  ;;  %v220_v13 = vsel %vm218_vm0, %v219_v6, %v217_v9  ;;  %v253_v31 = vsel %vm252_vm9, %v251_v21, %v246_v27 }
  0xdc   :  { %v466_v14 = vpop.eup %465  ;;  %v192_v16 = vsel %vm190_vm13, %v191_v63, %v189_v11  ;;  %v222_v17 = vmul.f32 %v464_v10, %v613_v37  ;;  %v280_v5 = vrot.slane %v220_v13, %v626_v47 }
  0xdd   :  { %v194_v19 = vmul.f32 %v466_v14, %v618_v40  ;;  %v258_v23 = vrot.slane %v192_v16, %v626_v47 }
  0xde   :  { %v224_v8 = vsel %vm223_vm1, %v613_v37, %v222_v17  ;;  %v281_v33 = vsel %vm259_vm11, %v280_v5, %v276_v29 }
  0xdf   :  { %v196_v25 = vsel %vm195_vm3, %v618_v40, %v194_v19  ;;  %v227_v26 = vsel %vm225_vm2, %v226_v20, %v224_v8  ;;  %v260_v34 = vsel %vm259_vm11, %v258_v23, %v253_v31 }
  0xe0   :  { %v199_v28 = vsel %vm197_vm4, %v198_v22, %v196_v25  ;;  %v285_v30 = vrot.slane %v227_v26, %v628_v48 }
  0xe1   :  { %v265_v32 = vrot.slane %v199_v28, %v628_v48 }
  0xe2   :  { %v286_v35 = vsel %vm266_vm15, %v285_v30, %v281_v33 }
  0xe3   :  { %v267_v36 = vsel %vm266_vm15, %v265_v32, %v260_v34 }
  0xe4   :  { %v288_v37 = vsel %vm287_vm5, %v286_v35, %v267_v36 }
  0xe5   :  { %426 = vmatmul.mubr.msk.f32.vlgmr.msra.gmra.mxu0 %vm289_vm6, %v288_v37 }
 0x1a5   :  { %v358_v39 = vpop.f32.mrf.mxu0 }
 0x1a6   :  { %v362_v40 = vadd.f32 %v358_v39, %v228_v38 }
 0x1a7   :  { %v427_v41 = vpop.f32.mrf.mxu0 }
 0x1a8   :  { %363 = vst [vmem:[#allocation2] sm:$0x3] %v362_v40 }
 0x1af   :  { %v367_v43 = vld [vmem:[#allocation2] sm:$0x3] }
 0x1b0   :  { %v375_v45 = vmul.f32 %v410_v42, %v367_v43 }
 0x1b2   :  { %v383_v46 = vadd.f32 %v411_v44, %v375_v45 }
 0x1b4   :  { %v384_v47 = vmul.f32 %v383_v46, %v383_v46 }
 0x1b6   :  { %v386_v48 = vsel %vm385_vm7, %v384_v47, 0.0 }
 0x1b7   :  { %387 = vadd.xlane.f32.xlu0 %v386_v48 }
 0x240   :  { %v388_v49 = vpop.xlane.xlu0 %387 }
 0x241   :  { %v389_v50 = vmax.f32 %v388_v49, 1e-24 }
 0x243   :  { %467 = vrsqrt.f32 %v389_v50 }
 0x250   :  { %v468_v51 = vpop.eup %467 }
 0x251   :  { %v391_v52 = vmul.f32 %v468_v51, %v383_v46 }
 0x253   :  { %392 = vst [vmem:[#allocation8] sm:$0x3] %v391_v52 }
 0x254   :  { %520 = shalt.err (!%p517_p0)
}
 0x255   :  { %402 = dma.vmem_to_hbm [thread:$0]  %s400_s30, 32, %s718_s4, [#allocation5]  }
 0x256   :  { %533 = dma.done.wait [#allocation5], 32  }
 0x257   :  { %534 = vsyncadd [#allocation5], 4294967264 }
 0x258   :  { %406 = vsyncpa [#allocation4], 1 }
 0x259   :  { %407 = vsyncpa [#allocation7], 1 }
 0x25a   :  { %408 = vsyncpa [#allocation5], 1 }

</bundles_post_ra>
